<compile_context>
chip_gen: v7x
topology: tpu7x:2x2x1
jax: 0.10.0
libtpu: 0.0.40
codegen_flags: <defaults>
</compile_context>

<pallas_src>
import math
import functools

import jax
import jax.numpy as jnp
from jax import lax
from jax.experimental import pallas as pl
from jax.experimental.pallas import tpu as pltpu


def _mapping_kernel(x_ref, wt_ref, b_ref, o_ref, *, n_layers, mxu_dtype):
    """One batch tile of the whole mapping network.

    x_ref:  [TB, D]           activations tile (f32)
    wt_ref: [L, D_in, D_out]  pre-transposed, pre-scaled, pre-cast weights (resident)
    b_ref:  [L, 1, D_out]     pre-scaled biases (f32, resident)
    """
    x = x_ref[...].astype(jnp.float32)                         # [TB, D]

    # ---- PixelNorm --------------------------------------------------------
    mean_sq = jnp.mean(x * x, axis=-1, keepdims=True)          # [TB, 1]
    h = x * lax.rsqrt(mean_sq + 1e-8)                          # [TB, D]

    # ---- n_layers x (matmul + bias + leaky-relu) ---------------------------
    # Weights already carry lr_mult/sqrt(fan_in)*sqrt(2); biases carry
    # lr_mult*sqrt(2); so max(y, 0.2*y) == leaky_relu(unscaled)*sqrt(2).
    # Static unroll: n_layers is small (8).
    for l in range(n_layers):
        y = jnp.dot(h.astype(mxu_dtype), wt_ref[l],
                    preferred_element_type=jnp.float32) + b_ref[l]
        h = jnp.maximum(y, 0.2 * y)

    o_ref[...] = h.astype(o_ref.dtype)


def _round_to(v, m):
    return max(m, (v // m) * m)


def latent_mapping_pallas(x, weights, biases, lr_multiplier, *,
                          tile_b=None, mxu_dtype=jnp.bfloat16):
    """x: [B, D] f32; weights: [L, D_out, D_in] (PyTorch layout); biases: [L, D_out].

    mxu_dtype=bfloat16 (default) is the production path: weights are scaled and
    cast once in the wrapper, dots accumulate in f32. Pass jnp.float32 to match
    an f32 reference bit-tightly.
    """
    B, D = x.shape
    L, d_out, d_in = weights.shape
    # Stacked layout requires z_dim == w_dim (true for this module's layer stack);
    # the fan_in used below is therefore correct for every layer.
    assert d_out == d_in == D, "stacked mapping-network weights must be square"

    # ---- one-time parameter preprocessing (amortized across calls) ---------
    act_gain = math.sqrt(2.0)
    w_gain = lr_multiplier / math.sqrt(d_in) * act_gain
    b_gain = lr_multiplier * act_gain
    weights_t = jnp.swapaxes(weights.astype(jnp.float32) * w_gain, -1, -2)  # [L, Din, Dout]
    weights_t = weights_t.astype(mxu_dtype)
    biases_s = (biases.astype(jnp.float32) * b_gain).reshape(L, 1, d_out)   # [L, 1, Dout]

    # ---- batch tile selection ----------------------------------------------
    if tile_b is None:
        if B <= 256:
            tile_b = B                                   # small batch: one tile
        else:
            # >=2 tiles so v7x dual-TC "parallel" sharding has work; 256-512
            # rows per tile keeps the MXU M dim full and amortizes per-step cost.
            half = -(-B // 2)
            tile_b = min(512, max(256, ((half + 15) // 16) * 16))
    if tile_b != B:
        # multiple of 16: satisfies the (8,*) block constraint for the f32
        # activation tile and bf16 sublane packing for the cast intermediate.
        tile_b = _round_to(min(tile_b, B), 16)
    grid = (pl.cdiv(B, tile_b),)

    kernel = functools.partial(_mapping_kernel, n_layers=L, mxu_dtype=mxu_dtype)

    return pl.pallas_call(
        kernel,
        out_shape=jax.ShapeDtypeStruct((B, D), x.dtype),
        grid_spec=pltpu.PrefetchScalarGridSpec(
            num_scalar_prefetch=0,
            grid=grid,
            in_specs=[
                pl.BlockSpec((tile_b, D), lambda i: (i, 0)),          # x: batch-tiled
                pl.BlockSpec((L, D, D), lambda i: (0, 0, 0),          # weights: resident,
                             pipeline_mode=pl.Buffered(1)),           #  single-buffered
                pl.BlockSpec((L, 1, D), lambda i: (0, 0, 0),          # biases: resident,
                             pipeline_mode=pl.Buffered(1)),           #  single-buffered
            ],
            out_specs=pl.BlockSpec((tile_b, D), lambda i: (i, 0)),
        ),
        compiler_params=pltpu.CompilerParams(
            dimension_semantics=("parallel",),            # dual-TC sharding on v7x
            vmem_limit_bytes=32 * 1024 * 1024,            # raise v5e's 16 MiB default
        ),
    )(x, weights_t, biases_s)


def latent_mapping_ref(x, weights, biases, lr_multiplier):
    """Pure-JAX reference (mirrors the PyTorch forward)."""
    D = x.shape[-1]
    h = x * lax.rsqrt(jnp.mean(x * x, axis=-1, keepdims=True) + 1e-8)
    for l in range(weights.shape[0]):
        w = weights[l] * (lr_multiplier / math.sqrt(weights.shape[-1]))
        b = biases[l] * lr_multiplier
        y = h @ w.T + b[None, :]
        h = jnp.where(y > 0, y, 0.2 * y) * math.sqrt(2.0)
    return h


if __name__ == "__main__":
    # Small, deterministic config: latent_dims=(32, 32), n_layers=8, lr_mult=0.01.
    B = 2
    Z_DIM = 32
    W_DIM = 32  # z_dim == w_dim so all layer weights can be stacked
    N_LAYERS = 8
    LR_MULT = 0.01

    key = jax.random.PRNGKey(0)
    kx, kw = jax.random.split(key)

    x = jax.random.normal(kx, (B, Z_DIM), dtype=jnp.float32)
    # Equalized-LR init: weight ~ N(0,1) / lr_multiplier, bias = 0.
    weights = jax.random.normal(kw, (N_LAYERS, W_DIM, W_DIM), dtype=jnp.float32) / LR_MULT
    biases = jnp.zeros((N_LAYERS, W_DIM), dtype=jnp.float32)

    # ---- small demo config (single grid step), f32 MXU path ----------------
    out = latent_mapping_pallas(x, weights, biases, LR_MULT, mxu_dtype=jnp.float32)
    out = jax.block_until_ready(out)
    ref = latent_mapping_ref(x, weights, biases, LR_MULT)
    assert out.shape == (B, W_DIM)
    assert jnp.allclose(out, ref, atol=1e-4, rtol=1e-4), "mismatch vs reference (B=2)"

    # ---- batched-grid path (multi-step grid, resident single-buffered weights) ----
    B2 = 64
    x2 = jax.random.normal(jax.random.PRNGKey(1), (B2, Z_DIM), dtype=jnp.float32)
    out2 = latent_mapping_pallas(x2, weights, biases, LR_MULT,
                                 tile_b=16, mxu_dtype=jnp.float32)
    out2 = jax.block_until_ready(out2)
    ref2 = latent_mapping_ref(x2, weights, biases, LR_MULT)
    assert out2.shape == (B2, W_DIM)
    assert jnp.allclose(out2, ref2, atol=1e-4, rtol=1e-4), "mismatch vs reference (B=64)"

    # ---- ragged batch (B not a multiple of tile_b): padded rows are masked ----
    B3 = 100
    x3 = jax.random.normal(jax.random.PRNGKey(2), (B3, Z_DIM), dtype=jnp.float32)
    out3 = latent_mapping_pallas(x3, weights, biases, LR_MULT,
                                 tile_b=16, mxu_dtype=jnp.float32)
    out3 = jax.block_until_ready(out3)
    ref3 = latent_mapping_ref(x3, weights, biases, LR_MULT)
    assert out3.shape == (B3, W_DIM)
    assert jnp.allclose(out3, ref3, atol=1e-4, rtol=1e-4), "mismatch vs reference (B=100 ragged)"

    # ---- default bf16 MXU path (production config style), loose tolerance ----
    out4 = latent_mapping_pallas(x2, weights, biases, LR_MULT)   # mxu_dtype=bf16 default
    out4 = jax.block_until_ready(out4)
    assert bool(jnp.all(jnp.isfinite(out4)))
    assert jnp.allclose(out4, ref2, atol=0.25, rtol=0.25), "bf16 path diverged from f32 reference"

    print("KERNEL_OK")
</pallas_src>

<mosaic_0001>
module attributes {stable_mosaic.version = 11 : i64} {
  func.func @_mapping_kernel(%arg0: i32, %arg1: memref<2x32xf32, #tpu.memory_space<vmem>>, %arg2: memref<8x32x32xf32, #tpu.memory_space<vmem>>, %arg3: memref<8x1x32xf32, #tpu.memory_space<vmem>>, %arg4: memref<2x32xf32, #tpu.memory_space<vmem>>) attributes {dimension_semantics = [#tpu.dimension_semantics<parallel>], iteration_bounds = array<i64: 1>, scalar_prefetch = 0 : i64, scratch_operands = 0 : i64, tpu.core_type = #tpu.core_type<tc>, window_params = [{transform_indices = @transform_0, window_bounds = array<i64: 2, 32>}, {pipeline_mode = #tpu.pipeline_mode<synchronous>, transform_indices = @transform_1, window_bounds = array<i64: 8, 32, 32>}, {pipeline_mode = #tpu.pipeline_mode<synchronous>, transform_indices = @transform_2, window_bounds = array<i64: 8, 1, 32>}, {transform_indices = @transform_3, window_bounds = array<i64: 2, 32>}]} {
    %c0 = arith.constant 0 : index
    %c0_0 = arith.constant 0 : index
    %0 = vector.load %arg1[%c0, %c0_0] : memref<2x32xf32, #tpu.memory_space<vmem>>, vector<2x32xf32>
    %1 = arith.mulf %0, %0 : vector<2x32xf32>
    %cst = arith.constant dense<0.000000e+00> : vector<2xf32>
    %2 = vector.multi_reduction <add>, %1, %cst [1] : vector<2x32xf32> to vector<2xf32>
    %3 = vector.shape_cast %2 : vector<2xf32> to vector<2x1xf32>
    %cst_1 = arith.constant 3.200000e+01 : f32
    %4 = vector.broadcast %cst_1 : f32 to vector<2x1xf32>
    %5 = arith.divf %3, %4 : vector<2x1xf32>
    %cst_2 = arith.constant 9.99999993E-9 : f32
    %6 = vector.broadcast %cst_2 : f32 to vector<2x1xf32>
    %7 = arith.addf %5, %6 : vector<2x1xf32>
    %8 = math.rsqrt %7 : vector<2x1xf32>
    %9 = vector.broadcast %8 : vector<2x1xf32> to vector<2x32xf32>
    %10 = arith.mulf %0, %9 : vector<2x32xf32>
    %c0_3 = arith.constant 0 : index
    %c0_4 = arith.constant 0 : index
    %c0_5 = arith.constant 0 : index
    %11 = vector.load %arg2[%c0_3, %c0_4, %c0_5] : memref<8x32x32xf32, #tpu.memory_space<vmem>>, vector<1x32x32xf32>
    %12 = vector.shape_cast %11 : vector<1x32x32xf32> to vector<32x32xf32>
    %cst_6 = arith.constant dense<0.000000e+00> : vector<2x32xf32>
    %13 = tpu.matmul %10, %12, %cst_6 {dimension_numbers = #tpu.dot_dimension_numbers<[1], [0], [0], [1], [0, 0, 1, 1], [], []>} : vector<2x32xf32>, vector<32x32xf32>, vector<2x32xf32> -> vector<2x32xf32>
    %c0_7 = arith.constant 0 : index
    %c0_8 = arith.constant 0 : index
    %c0_9 = arith.constant 0 : index
    %14 = vector.load %arg3[%c0_7, %c0_8, %c0_9] : memref<8x1x32xf32, #tpu.memory_space<vmem>>, vector<1x1x32xf32>
    %15 = vector.shape_cast %14 : vector<1x1x32xf32> to vector<1x32xf32>
    %16 = vector.broadcast %15 : vector<1x32xf32> to vector<2x32xf32>
    %17 = arith.addf %13, %16 : vector<2x32xf32>
    %cst_10 = arith.constant 2.000000e-01 : f32
    %18 = vector.broadcast %cst_10 : f32 to vector<2x32xf32>
    %19 = arith.mulf %18, %17 : vector<2x32xf32>
    %20 = arith.maximumf %17, %19 : vector<2x32xf32>
    %c1 = arith.constant 1 : index
    %c0_11 = arith.constant 0 : index
    %c0_12 = arith.constant 0 : index
    %21 = vector.load %arg2[%c1, %c0_11, %c0_12] : memref<8x32x32xf32, #tpu.memory_space<vmem>>, vector<1x32x32xf32>
    %22 = vector.shape_cast %21 : vector<1x32x32xf32> to vector<32x32xf32>
    %cst_13 = arith.constant dense<0.000000e+00> : vector<2x32xf32>
    %23 = tpu.matmul %20, %22, %cst_13 {dimension_numbers = #tpu.dot_dimension_numbers<[1], [0], [0], [1], [0, 0, 1, 1], [], []>} : vector<2x32xf32>, vector<32x32xf32>, vector<2x32xf32> -> vector<2x32xf32>
    %c1_14 = arith.constant 1 : index
    %c0_15 = arith.constant 0 : index
    %c0_16 = arith.constant 0 : index
    %24 = vector.load %arg3[%c1_14, %c0_15, %c0_16] : memref<8x1x32xf32, #tpu.memory_space<vmem>>, vector<1x1x32xf32>
    %25 = vector.shape_cast %24 : vector<1x1x32xf32> to vector<1x32xf32>
    %26 = vector.broadcast %25 : vector<1x32xf32> to vector<2x32xf32>
    %27 = arith.addf %23, %26 : vector<2x32xf32>
    %cst_17 = arith.constant 2.000000e-01 : f32
    %28 = vector.broadcast %cst_17 : f32 to vector<2x32xf32>
    %29 = arith.mulf %28, %27 : vector<2x32xf32>
    %30 = arith.maximumf %27, %29 : vector<2x32xf32>
    %c2 = arith.constant 2 : index
    %c0_18 = arith.constant 0 : index
    %c0_19 = arith.constant 0 : index
    %31 = vector.load %arg2[%c2, %c0_18, %c0_19] : memref<8x32x32xf32, #tpu.memory_space<vmem>>, vector<1x32x32xf32>
    %32 = vector.shape_cast %31 : vector<1x32x32xf32> to vector<32x32xf32>
    %cst_20 = arith.constant dense<0.000000e+00> : vector<2x32xf32>
    %33 = tpu.matmul %30, %32, %cst_20 {dimension_numbers = #tpu.dot_dimension_numbers<[1], [0], [0], [1], [0, 0, 1, 1], [], []>} : vector<2x32xf32>, vector<32x32xf32>, vector<2x32xf32> -> vector<2x32xf32>
    %c2_21 = arith.constant 2 : index
    %c0_22 = arith.constant 0 : index
    %c0_23 = arith.constant 0 : index
    %34 = vector.load %arg3[%c2_21, %c0_22, %c0_23] : memref<8x1x32xf32, #tpu.memory_space<vmem>>, vector<1x1x32xf32>
    %35 = vector.shape_cast %34 : vector<1x1x32xf32> to vector<1x32xf32>
    %36 = vector.broadcast %35 : vector<1x32xf32> to vector<2x32xf32>
    %37 = arith.addf %33, %36 : vector<2x32xf32>
    %cst_24 = arith.constant 2.000000e-01 : f32
    %38 = vector.broadcast %cst_24 : f32 to vector<2x32xf32>
    %39 = arith.mulf %38, %37 : vector<2x32xf32>
    %40 = arith.maximumf %37, %39 : vector<2x32xf32>
    %c3 = arith.constant 3 : index
    %c0_25 = arith.constant 0 : index
    %c0_26 = arith.constant 0 : index
    %41 = vector.load %arg2[%c3, %c0_25, %c0_26] : memref<8x32x32xf32, #tpu.memory_space<vmem>>, vector<1x32x32xf32>
    %42 = vector.shape_cast %41 : vector<1x32x32xf32> to vector<32x32xf32>
    %cst_27 = arith.constant dense<0.000000e+00> : vector<2x32xf32>
    %43 = tpu.matmul %40, %42, %cst_27 {dimension_numbers = #tpu.dot_dimension_numbers<[1], [0], [0], [1], [0, 0, 1, 1], [], []>} : vector<2x32xf32>, vector<32x32xf32>, vector<2x32xf32> -> vector<2x32xf32>
    %c3_28 = arith.constant 3 : index
    %c0_29 = arith.constant 0 : index
    %c0_30 = arith.constant 0 : index
    %44 = vector.load %arg3[%c3_28, %c0_29, %c0_30] : memref<8x1x32xf32, #tpu.memory_space<vmem>>, vector<1x1x32xf32>
    %45 = vector.shape_cast %44 : vector<1x1x32xf32> to vector<1x32xf32>
    %46 = vector.broadcast %45 : vector<1x32xf32> to vector<2x32xf32>
    %47 = arith.addf %43, %46 : vector<2x32xf32>
    %cst_31 = arith.constant 2.000000e-01 : f32
    %48 = vector.broadcast %cst_31 : f32 to vector<2x32xf32>
    %49 = arith.mulf %48, %47 : vector<2x32xf32>
    %50 = arith.maximumf %47, %49 : vector<2x32xf32>
    %c4 = arith.constant 4 : index
    %c0_32 = arith.constant 0 : index
    %c0_33 = arith.constant 0 : index
    %51 = vector.load %arg2[%c4, %c0_32, %c0_33] : memref<8x32x32xf32, #tpu.memory_space<vmem>>, vector<1x32x32xf32>
    %52 = vector.shape_cast %51 : vector<1x32x32xf32> to vector<32x32xf32>
    %cst_34 = arith.constant dense<0.000000e+00> : vector<2x32xf32>
    %53 = tpu.matmul %50, %52, %cst_34 {dimension_numbers = #tpu.dot_dimension_numbers<[1], [0], [0], [1], [0, 0, 1, 1], [], []>} : vector<2x32xf32>, vector<32x32xf32>, vector<2x32xf32> -> vector<2x32xf32>
    %c4_35 = arith.constant 4 : index
    %c0_36 = arith.constant 0 : index
    %c0_37 = arith.constant 0 : index
    %54 = vector.load %arg3[%c4_35, %c0_36, %c0_37] : memref<8x1x32xf32, #tpu.memory_space<vmem>>, vector<1x1x32xf32>
    %55 = vector.shape_cast %54 : vector<1x1x32xf32> to vector<1x32xf32>
    %56 = vector.broadcast %55 : vector<1x32xf32> to vector<2x32xf32>
    %57 = arith.addf %53, %56 : vector<2x32xf32>
    %cst_38 = arith.constant 2.000000e-01 : f32
    %58 = vector.broadcast %cst_38 : f32 to vector<2x32xf32>
    %59 = arith.mulf %58, %57 : vector<2x32xf32>
    %60 = arith.maximumf %57, %59 : vector<2x32xf32>
    %c5 = arith.constant 5 : index
    %c0_39 = arith.constant 0 : index
    %c0_40 = arith.constant 0 : index
    %61 = vector.load %arg2[%c5, %c0_39, %c0_40] : memref<8x32x32xf32, #tpu.memory_space<vmem>>, vector<1x32x32xf32>
    %62 = vector.shape_cast %61 : vector<1x32x32xf32> to vector<32x32xf32>
    %cst_41 = arith.constant dense<0.000000e+00> : vector<2x32xf32>
    %63 = tpu.matmul %60, %62, %cst_41 {dimension_numbers = #tpu.dot_dimension_numbers<[1], [0], [0], [1], [0, 0, 1, 1], [], []>} : vector<2x32xf32>, vector<32x32xf32>, vector<2x32xf32> -> vector<2x32xf32>
    %c5_42 = arith.constant 5 : index
    %c0_43 = arith.constant 0 : index
    %c0_44 = arith.constant 0 : index
    %64 = vector.load %arg3[%c5_42, %c0_43, %c0_44] : memref<8x1x32xf32, #tpu.memory_space<vmem>>, vector<1x1x32xf32>
    %65 = vector.shape_cast %64 : vector<1x1x32xf32> to vector<1x32xf32>
    %66 = vector.broadcast %65 : vector<1x32xf32> to vector<2x32xf32>
    %67 = arith.addf %63, %66 : vector<2x32xf32>
    %cst_45 = arith.constant 2.000000e-01 : f32
    %68 = vector.broadcast %cst_45 : f32 to vector<2x32xf32>
    %69 = arith.mulf %68, %67 : vector<2x32xf32>
    %70 = arith.maximumf %67, %69 : vector<2x32xf32>
    %c6 = arith.constant 6 : index
    %c0_46 = arith.constant 0 : index
    %c0_47 = arith.constant 0 : index
    %71 = vector.load %arg2[%c6, %c0_46, %c0_47] : memref<8x32x32xf32, #tpu.memory_space<vmem>>, vector<1x32x32xf32>
    %72 = vector.shape_cast %71 : vector<1x32x32xf32> to vector<32x32xf32>
    %cst_48 = arith.constant dense<0.000000e+00> : vector<2x32xf32>
    %73 = tpu.matmul %70, %72, %cst_48 {dimension_numbers = #tpu.dot_dimension_numbers<[1], [0], [0], [1], [0, 0, 1, 1], [], []>} : vector<2x32xf32>, vector<32x32xf32>, vector<2x32xf32> -> vector<2x32xf32>
    %c6_49 = arith.constant 6 : index
    %c0_50 = arith.constant 0 : index
    %c0_51 = arith.constant 0 : index
    %74 = vector.load %arg3[%c6_49, %c0_50, %c0_51] : memref<8x1x32xf32, #tpu.memory_space<vmem>>, vector<1x1x32xf32>
    %75 = vector.shape_cast %74 : vector<1x1x32xf32> to vector<1x32xf32>
    %76 = vector.broadcast %75 : vector<1x32xf32> to vector<2x32xf32>
    %77 = arith.addf %73, %76 : vector<2x32xf32>
    %cst_52 = arith.constant 2.000000e-01 : f32
    %78 = vector.broadcast %cst_52 : f32 to vector<2x32xf32>
    %79 = arith.mulf %78, %77 : vector<2x32xf32>
    %80 = arith.maximumf %77, %79 : vector<2x32xf32>
    %c7 = arith.constant 7 : index
    %c0_53 = arith.constant 0 : index
    %c0_54 = arith.constant 0 : index
    %81 = vector.load %arg2[%c7, %c0_53, %c0_54] : memref<8x32x32xf32, #tpu.memory_space<vmem>>, vector<1x32x32xf32>
    %82 = vector.shape_cast %81 : vector<1x32x32xf32> to vector<32x32xf32>
    %cst_55 = arith.constant dense<0.000000e+00> : vector<2x32xf32>
    %83 = tpu.matmul %80, %82, %cst_55 {dimension_numbers = #tpu.dot_dimension_numbers<[1], [0], [0], [1], [0, 0, 1, 1], [], []>} : vector<2x32xf32>, vector<32x32xf32>, vector<2x32xf32> -> vector<2x32xf32>
    %c7_56 = arith.constant 7 : index
    %c0_57 = arith.constant 0 : index
    %c0_58 = arith.constant 0 : index
    %84 = vector.load %arg3[%c7_56, %c0_57, %c0_58] : memref<8x1x32xf32, #tpu.memory_space<vmem>>, vector<1x1x32xf32>
    %85 = vector.shape_cast %84 : vector<1x1x32xf32> to vector<1x32xf32>
    %86 = vector.broadcast %85 : vector<1x32xf32> to vector<2x32xf32>
    %87 = arith.addf %83, %86 : vector<2x32xf32>
    %cst_59 = arith.constant 2.000000e-01 : f32
    %88 = vector.broadcast %cst_59 : f32 to vector<2x32xf32>
    %89 = arith.mulf %88, %87 : vector<2x32xf32>
    %90 = arith.maximumf %87, %89 : vector<2x32xf32>
    %c0_60 = arith.constant 0 : index
    %c0_61 = arith.constant 0 : index
    %91 = vector.load %arg4[%c0_60, %c0_61] : memref<2x32xf32, #tpu.memory_space<vmem>>, vector<2x32xf32>
    tpu.vector_store %arg4[%c0_60, %c0_61], %90 {strides = array<i32>} : memref<2x32xf32, #tpu.memory_space<vmem>>, vector<2x32xf32>,
    return
  }
  func.func @transform_0(%arg0: i32) -> (i32, i32) {
    %c0_i32 = arith.constant 0 : i32
    %c0_i32_0 = arith.constant 0 : i32
    return %arg0, %c0_i32 : i32, i32
  }
  func.func @transform_1(%arg0: i32) -> (i32, i32, i32) {
    %c0_i32 = arith.constant 0 : i32
    %c0_i32_0 = arith.constant 0 : i32
    %c0_i32_1 = arith.constant 0 : i32
    %c0_i32_2 = arith.constant 0 : i32
    return %c0_i32, %c0_i32_0, %c0_i32_1 : i32, i32, i32
  }
  func.func @transform_2(%arg0: i32) -> (i32, i32, i32) {
    %c0_i32 = arith.constant 0 : i32
    %c0_i32_0 = arith.constant 0 : i32
    %c0_i32_1 = arith.constant 0 : i32
    %c0_i32_2 = arith.constant 0 : i32
    return %c0_i32, %c0_i32_0, %c0_i32_1 : i32, i32, i32
  }
  func.func @transform_3(%arg0: i32) -> (i32, i32) {
    %c0_i32 = arith.constant 0 : i32
    %c0_i32_0 = arith.constant 0 : i32
    return %arg0, %c0_i32 : i32, i32
  }
}

</mosaic_0001>

<bundles_post_ra>
// kernel: tpu_custom_call.1
= control target key start
LH: loop header
LB: loop body
LE: loop exit
PB: predicated region body
PF: predicated region fallthrough
CT: control target
= control target key end

     0   :  { %8 = vsyncpa [#allocation3], 0  ;;  %s1205_s0 = inlined_call_operand.hbm [shape: f32[2,32], index: 0, kind: input, shape index: {}]   ;;  %s1206_s1 = inlined_call_operand.hbm [shape: f32[8,32,32], index: 1, kind: input, shape index: {}]   ;;  %s1207_s2 = inlined_call_operand.hbm [shape: f32[8,1,32], index: 2, kind: input, shape index: {}]   ;;  %s1208_s3 = inlined_call_operand.hbm [shape: f32[2,32], index: 3, kind: output, shape index: {}]  }
   0x1   :  { %9 = vsyncpa [#allocation6], 0 }
   0x2   :  { %10 = vsyncpa [#allocation4], 0  ;;  %s1084_s12 = smov [#allocation5]   ;;  %s990_s16 = scalar_lea.hbm %s1206_s1, 4096 }
   0x3   :  { %s26_s13 = sshll.u32 %s1084_s12, 4  ;;  %p991_p0 = scmp.ne.s32.totalorder %s1206_s1, %s990_s16  ;;  %s27_s13 = int_to_ptr.vmem [resolvable:$true] %s26_s13 }
   0x4   :  { %p994_p1 = scmp.lt.u32.totalorder %s990_s16, %s1206_s1 }
   0x6   :  { %p996_p2 = pnand %p994_p1, %p991_p0 }
   0x8   :  { %999 = shalt.err (!%p996_p2)
}
   0x9   :  { %s1000_s21 = scalar_lea.vmem %s27_s13, 4096  ;;  %p1005_p4 = scmp.lt.s32.totalorder %s27_s13, %s27_s13 }
   0xa   :  { %p1001_p3 = scmp.ne.s32.totalorder %s27_s13, %s1000_s21  ;;  %p1006_p5 = scmp.lt.s32.totalorder %s1000_s21, %s1000_s21 }
   0xc   :  { %p1007_p6 = por %p1006_p5, %p1005_p4 }
   0xe   :  { %p1008_p7 = pnand %p1007_p6, %p1001_p3 }
  0x10   :  { %1011 = shalt.err (!%p1008_p7)
}
  0x11   :  { %s1085_s22 = smov 128   ;;  %s1086_s23 = smov 8  }
  0x12   :  { %32 = dma.hbm_to_vmem [thread:$0]  %s1206_s1, 4096, %s27_s13, [#allocation6], %s1085_s22, %s1085_s22, %s1086_s23  }
  0x13   :  { %s1087_s26 = smov [#allocation2]   ;;  %s1088_s28 = smov [#allocation7]  }
  0x14   :  { %s17_s27 = sshll.u32 %s1087_s26, 4  ;;  %s38_s29 = sshll.u32 %s1088_s28, 4  ;;  %s18_s27 = int_to_ptr.vmem [resolvable:$true] %s17_s27  ;;  %s39_s29 = int_to_ptr.vmem [resolvable:$true] %s38_s29 }
  0x15   :  { %s1012_s5 = scalar_lea.hbm %s1205_s0, 32 }
  0x16   :  { %p1013_p8 = scmp.ne.s32.totalorder %s1205_s0, %s1012_s5  ;;  %p1016_p9 = scmp.lt.u32.totalorder %s1012_s5, %s1205_s0 }
  0x18   :  { %p1018_p10 = pnand %p1016_p9, %p1013_p8 }
  0x1a   :  { %1021 = shalt.err (!%p1018_p10)
}
  0x1b   :  { %s1022_s1 = scalar_lea.vmem %s18_s27, 32  ;;  %p1027_p12 = scmp.lt.s32.totalorder %s18_s27, %s18_s27 }
  0x1c   :  { %p1023_p11 = scmp.ne.s32.totalorder %s18_s27, %s1022_s1  ;;  %p1028_p13 = scmp.lt.s32.totalorder %s1022_s1, %s1022_s1 }
  0x1e   :  { %p1029_p0 = por %p1028_p13, %p1027_p12 }
  0x20   :  { %p1030_p1 = pnand %p1029_p0, %p1023_p11 }
  0x22   :  { %1033 = shalt.err (!%p1030_p1)
}
  0x23   :  { %20 = dma.hbm_to_vmem [thread:$0]  %s1205_s0, 32, %s18_s27, [#allocation3]  }
  0x24   :  { %s1034_s14 = scalar_lea.hbm %s1207_s2, 128 }
  0x25   :  { %p1035_p2 = scmp.ne.s32.totalorder %s1207_s2, %s1034_s14  ;;  %p1038_p3 = scmp.lt.u32.totalorder %s1034_s14, %s1207_s2 }
  0x27   :  { %p1040_p4 = pnand %p1038_p3, %p1035_p2 }
  0x29   :  { %1043 = shalt.err (!%p1040_p4)
}
  0x2a   :  { %s1044_s19 = scalar_lea.vmem %s39_s29, 128  ;;  %p1049_p6 = scmp.lt.s32.totalorder %s39_s29, %s39_s29 }
  0x2b   :  { %p1045_p5 = scmp.ne.s32.totalorder %s39_s29, %s1044_s19  ;;  %p1050_p7 = scmp.lt.s32.totalorder %s1044_s19, %s1044_s19 }
  0x2d   :  { %p1051_p8 = por %p1050_p7, %p1049_p6 }
  0x2f   :  { %p1052_p9 = pnand %p1051_p8, %p1045_p5 }
  0x31   :  { %1055 = shalt.err (!%p1052_p9)
}
  0x32   :  { %s1089_s0 = smov 16   ;;  %s1090_s20 = smov 1  }
  0x33   :  { %44 = dma.hbm_to_vmem [thread:$0]  %s1207_s2, 128, %s39_s29, [#allocation6], %s1089_s0, %s1089_s0, %s1090_s20  }
  0x34   :  { %1078 = dma.done.wait [#allocation3], 32  }
  0x35   :  { %1079 = vsyncadd [#allocation3], 4294967264 }
  0x36   :  { %1080 = dma.done.wait [#allocation6], 4224  }
  0x37   :  { %1081 = vsyncadd [#allocation6], 4294963072  ;;  %v54_v0 = vld [vmem:[#allocation2] sm:$0x3]  ;;  %vm56_vm0 = vcmask 254976   ;;  %v65_v3 = vld [vmem:[#allocation5] sm:$0xff] }
  0x38   :  { %v55_v1 = vmul.f32 %v54_v0, %v54_v0  ;;  %v66_v4 = vld [vmem:[#allocation5 + $0x8] sm:$0xff]  ;;  %v67_v5 = vld [vmem:[#allocation5 + $0x10] sm:$0xff]  ;;  %v1091_v6 = vmov 0.0|0.0   ;;  %v68_v8 = vld [vmem:[#allocation5 + $0x18] sm:$0xff]  ;;  %vm1092_vm1 = vmmov 0   ;;  %v1093_v9 = vmov 0.0  }
  0x39   :  { %929 = vmatprep.subr.bf16.mxu0 %v1091_v6  ;;  %v930_v7 = vpack.c.bf16 %v66_v4, %v65_v3  ;;  %849 = vmatprep.mubr.msk.f32.mxu0 %vm1092_vm1, %v1093_v9  ;;  %v933_v10 = vpack.c.bf16 %v68_v8, %v67_v5  ;;  %vm76_vm2 = vcmask 261120   ;;  %v153_v16 = vld [vmem:[#allocation5 + $0x20] sm:$0xff]  ;;  %v154_v17 = vld [vmem:[#allocation5 + $0x28] sm:$0xff]  ;;  %v155_v19 = vld [vmem:[#allocation5 + $0x30] sm:$0xff]  ;;  %s1094_s2 = smov [#allocation8]  }
  0x3a   :  { %v57_v2 = vsel %vm56_vm0, %v55_v1, 0.0  ;;  %935 = vmatprep.subr.bf16.mxu1 %v1091_v6  ;;  %860 = vmatprep.mubr.msk.f32.mxu1 %vm1092_vm1, %v1093_v9  ;;  %v936_v18 = vpack.c.bf16 %v154_v17, %v153_v16  ;;  %v156_v20 = vld [vmem:[#allocation5 + $0x38] sm:$0xff]  ;;  %v785_v22 = vld [vmem:[#allocation7] ss:$0 sm:$0xff]  ;;  %v242_v29 = vld [vmem:[#allocation5 + $0x48] sm:$0xff]  ;;  %s775_s23 = sshll.u32 %s1094_s2, 4  ;;  %s776_s23 = int_to_ptr.vmem [resolvable:$true] %s775_s23 }
  0x3b   :  { %58 = vadd.xlane.f32.xlu0 %v57_v2  ;;  %931 = vmatpush3.bf16.msra.mxu0 %v930_v7  ;;  %v939_v21 = vpack.c.bf16 %v156_v20, %v155_v19  ;;  %v241_v28 = vld [vmem:[#allocation5 + $0x40] sm:$0xff]  ;;  %v243_v31 = vld [vmem:[#allocation5 + $0x50] sm:$0xff]  ;;  %v244_v32 = vld [vmem:[#allocation5 + $0x58] sm:$0xff]  ;;  %s1056_s24 = scalar_lea.vmem %s776_s23, 32  ;;  %p1061_p11 = scmp.lt.s32.totalorder %s776_s23, %s776_s23 }
  0x3c   :  { %932 = vmatprep.subr.bf16.mxu0 %v1091_v6  ;;  %937 = vmatpush3.bf16.msra.mxu1 %v936_v18  ;;  %v942_v30 = vpack.c.bf16 %v242_v29, %v241_v28  ;;  %v945_v33 = vpack.c.bf16 %v244_v32, %v243_v31  ;;  %v787_v34 = vld [vmem:[#allocation7 + $0x1] ss:$0 sm:$0xff]  ;;  %v330_v41 = vld [vmem:[#allocation5 + $0x68] sm:$0xff]  ;;  %v331_v43 = vld [vmem:[#allocation5 + $0x70] sm:$0xff]  ;;  %p1057_p10 = scmp.ne.s32.totalorder %s776_s23, %s1056_s24  ;;  %p1062_p12 = scmp.lt.s32.totalorder %s1056_s24, %s1056_s24 }
  0x3d   :  { %938 = vmatprep.subr.bf16.mxu1 %v1091_v6  ;;  %v329_v40 = vld [vmem:[#allocation5 + $0x60] sm:$0xff]  ;;  %v332_v44 = vld [vmem:[#allocation5 + $0x78] sm:$0xff]  ;;  %v418_v53 = vld [vmem:[#allocation5 + $0x88] sm:$0xff] }
  0x3e   :  { %v948_v42 = vpack.c.bf16 %v330_v41, %v329_v40  ;;  %v951_v45 = vpack.c.bf16 %v332_v44, %v331_v43  ;;  %v789_v46 = vld [vmem:[#allocation7 + $0x2] ss:$0 sm:$0xff]  ;;  %v419_v55 = vld [vmem:[#allocation5 + $0x90] sm:$0xff]  ;;  %v420_v56 = vld [vmem:[#allocation5 + $0x98] sm:$0xff]  ;;  %p1063_p13 = por %p1062_p12, %p1061_p11 }
  0x3f   :  { %934 = vmatpush3.bf16.msra.mxu0 %v933_v10  ;;  %v417_v52 = vld [vmem:[#allocation5 + $0x80] sm:$0xff]  ;;  %v957_v57 = vpack.c.bf16 %v420_v56, %v419_v55  ;;  %v506_v1 = vld [vmem:[#allocation5 + $0xa8] sm:$0xff]  ;;  %v507_v3 = vld [vmem:[#allocation5 + $0xb0] sm:$0xff] }
  0x40   :  { %941 = vmatprep.subr.bf16.mxu0 %v1091_v6  ;;  %940 = vmatpush3.bf16.msra.mxu1 %v939_v21  ;;  %v954_v54 = vpack.c.bf16 %v418_v53, %v417_v52  ;;  %v791_v58 = vld [vmem:[#allocation7 + $0x3] ss:$0 sm:$0xff]  ;;  %v508_v4 = vld [vmem:[#allocation5 + $0xb8] sm:$0xff]  ;;  %v793_v7 = vld [vmem:[#allocation7 + $0x4] ss:$0 sm:$0xff]  ;;  %p1064_p0 = pnand %p1063_p13, %p1057_p10 }
  0x41   :  { %947 = vmatprep.subr.bf16.mxu1 %v1091_v6  ;;  %v963_v5 = vpack.c.bf16 %v508_v4, %v507_v3  ;;  %v595_v17 = vld [vmem:[#allocation5 + $0xd0] sm:$0xff]  ;;  %v596_v18 = vld [vmem:[#allocation5 + $0xd8] sm:$0xff]  ;;  %v795_v20 = vld [vmem:[#allocation7 + $0x5] ss:$0 sm:$0xff] }
  0x42   :  { %v969_v19 = vpack.c.bf16 %v596_v18, %v595_v17  ;;  %v683_v28 = vld [vmem:[#allocation5 + $0xf0] sm:$0xff]  ;;  %v684_v29 = vld [vmem:[#allocation5 + $0xf8] sm:$0xff]  ;;  %v797_v31 = vld [vmem:[#allocation7 + $0x6] ss:$0 sm:$0xff] }
  0xc8   :  { %v59_v11 = vpop.xlane.xlu0 %58 }
  0xc9   :  { %v61_v12 = vmul.f32 0.03125, %v59_v11 }
  0xcb   :  { %v62_v13 = vadd.f32 1e-08, %v61_v12 }
  0xcd   :  { %988 = vrsqrt.f32 %v62_v13 }
  0xd7   :  { %v989_v14 = vpop.eup %988 }
  0xd8   :  { %v64_v15 = vmul.f32 %v989_v14, %v54_v0  ;;  %v505_v0 = vld [vmem:[#allocation5 + $0xa0] sm:$0xff] }
  0xd9   :  { %v960_v2 = vpack.c.bf16 %v506_v1, %v505_v0  ;;  %v593_v14 = vld [vmem:[#allocation5 + $0xc0] sm:$0xff] }
  0xda   :  { %850 = vmatmul.mubr.msk.f32.vlgmr.msra.gmra.mrb[0].mxu0 %vm76_vm2, %v64_v15  ;;  %v594_v15 = vld [vmem:[#allocation5 + $0xc8] sm:$0xff] }
  0xdb   :  { %871 = vmatprep.mubr.msk.f32.mxu0 %vm1092_vm1, %v1093_v9  ;;  %943 = vmatpush3.bf16.msra.mxu0 %v942_v30  ;;  %v966_v16 = vpack.c.bf16 %v594_v15, %v593_v14  ;;  %v975_v30 = vpack.c.bf16 %v684_v29, %v683_v28 }
  0xdc   :  { %944 = vmatprep.subr.bf16.mxu0 %v1091_v6 }
  0xdf   :  { %946 = vmatpush3.bf16.msra.mxu0 %v945_v33 }
  0xe0   :  { %953 = vmatprep.subr.bf16.mxu0 %v1091_v6 }
 0x1ad   :  { %v146_v23 = vpop.f32.mrb[0].mxu0 }
 0x1ae   :  { %v147_v24 = vadd.f32 %v785_v22, %v146_v23  ;;  %v851_v25 = vpop.f32.mrb[1].mxu0 }
 0x1b0   :  { %v150_v26 = vmul.f32 0.2, %v147_v24 }
 0x1b2   :  { %v151_v27 = vmax.f32 %v147_v24, %v150_v26  ;;  %v681_v26 = vld [vmem:[#allocation5 + $0xe0] sm:$0xff] }
 0x1b4   :  { %861 = vmatmul.mubr.msk.f32.vlgmr.msra.gmra.mrb[0].mxu1 %vm76_vm2, %v151_v27 }
 0x1b5   :  { %882 = vmatprep.mubr.msk.f32.mxu1 %vm1092_vm1, %v1093_v9  ;;  %949 = vmatpush3.bf16.msra.mxu1 %v948_v42 }
 0x1b6   :  { %950 = vmatprep.subr.bf16.mxu1 %v1091_v6 }
 0x1b9   :  { %952 = vmatpush3.bf16.msra.mxu1 %v951_v45 }
 0x1ba   :  { %959 = vmatprep.subr.bf16.mxu1 %v1091_v6 }
 0x287   :  { %v234_v35 = vpop.f32.mrb[0].mxu1 }
 0x288   :  { %v235_v36 = vadd.f32 %v787_v34, %v234_v35  ;;  %v862_v37 = vpop.f32.mrb[1].mxu1 }
 0x289   :  { %v799_v37 = vld [vmem:[#allocation7 + $0x7] ss:$0 sm:$0xff] }
 0x28a   :  { %v238_v38 = vmul.f32 0.2, %v235_v36 }
 0x28c   :  { %v239_v39 = vmax.f32 %v235_v36, %v238_v38 }
 0x28e   :  { %872 = vmatmul.mubr.msk.f32.vlgmr.msra.gmra.mrb[2].mxu0 %vm76_vm2, %v239_v39 }
 0x28f   :  { %893 = vmatprep.mubr.msk.f32.mxu0 %vm1092_vm1, %v1093_v9  ;;  %955 = vmatpush3.bf16.msra.mxu0 %v954_v54 }
 0x290   :  { %956 = vmatprep.subr.bf16.mxu0 %v1091_v6 }
 0x293   :  { %958 = vmatpush3.bf16.msra.mxu0 %v957_v57 }
 0x294   :  { %965 = vmatprep.subr.bf16.mxu0 %v1091_v6 }
 0x361   :  { %v322_v47 = vpop.f32.mrb[2].mxu0 }
 0x362   :  { %v323_v48 = vadd.f32 %v789_v46, %v322_v47  ;;  %v873_v49 = vpop.f32.mrb[3].mxu0 }
 0x364   :  { %v326_v50 = vmul.f32 0.2, %v323_v48 }
 0x366   :  { %v327_v51 = vmax.f32 %v323_v48, %v326_v50 }
 0x368   :  { %883 = vmatmul.mubr.msk.f32.vlgmr.msra.gmra.mrb[2].mxu1 %vm76_vm2, %v327_v51 }
 0x369   :  { %904 = vmatprep.mubr.msk.f32.mxu1 %vm1092_vm1, %v1093_v9  ;;  %961 = vmatpush3.bf16.msra.mxu1 %v960_v2 }
 0x36a   :  { %962 = vmatprep.subr.bf16.mxu1 %v1091_v6 }
 0x36d   :  { %964 = vmatpush3.bf16.msra.mxu1 %v963_v5 }
 0x36e   :  { %971 = vmatprep.subr.bf16.mxu1 %v1091_v6 }
 0x43b   :  { %v410_v59 = vpop.f32.mrb[2].mxu1 }
 0x43c   :  { %v411_v60 = vadd.f32 %v791_v58, %v410_v59  ;;  %v884_v61 = vpop.f32.mrb[3].mxu1 }
 0x43e   :  { %v414_v62 = vmul.f32 0.2, %v411_v60 }
 0x440   :  { %v415_v63 = vmax.f32 %v411_v60, %v414_v62 }
 0x442   :  { %894 = vmatmul.mubr.msk.f32.vlgmr.msra.gmra.mrb[4].mxu0 %vm76_vm2, %v415_v63 }
 0x443   :  { %915 = vmatprep.mubr.msk.f32.mxu0 %vm1092_vm1, %v1093_v9  ;;  %967 = vmatpush3.bf16.msra.mxu0 %v966_v16 }
 0x444   :  { %968 = vmatprep.subr.bf16.mxu0 %v1091_v6 }
 0x447   :  { %970 = vmatpush3.bf16.msra.mxu0 %v969_v19 }
 0x515   :  { %v498_v8 = vpop.f32.mrb[4].mxu0 }
 0x516   :  { %v499_v10 = vadd.f32 %v793_v7, %v498_v8  ;;  %v895_v11 = vpop.f32.mrb[5].mxu0 }
 0x518   :  { %v502_v12 = vmul.f32 0.2, %v499_v10 }
 0x51a   :  { %v503_v13 = vmax.f32 %v499_v10, %v502_v12 }
 0x51c   :  { %905 = vmatmul.mubr.msk.f32.vlgmr.msra.gmra.mrb[4].mxu1 %vm76_vm2, %v503_v13 }
 0x51d   :  { %926 = vmatprep.mubr.msk.f32.mxu1 %vm1092_vm1, %v1093_v9  ;;  %v682_v9 = vld [vmem:[#allocation5 + $0xe8] sm:$0xff] }
 0x51e   :  { %v972_v27 = vpack.c.bf16 %v682_v9, %v681_v26 }
 0x520   :  { %973 = vmatpush3.bf16.msra.mxu1 %v972_v27 }
 0x521   :  { %974 = vmatprep.subr.bf16.mxu1 %v1091_v6 }
 0x524   :  { %976 = vmatpush3.bf16.msra.mxu1 %v975_v30 }
 0x5ef   :  { %v586_v21 = vpop.f32.mrb[4].mxu1 }
 0x5f0   :  { %v587_v22 = vadd.f32 %v795_v20, %v586_v21  ;;  %v906_v23 = vpop.f32.mrb[5].mxu1 }
 0x5f2   :  { %v590_v24 = vmul.f32 0.2, %v587_v22 }
 0x5f4   :  { %v591_v25 = vmax.f32 %v587_v22, %v590_v24 }
 0x5f6   :  { %916 = vmatmul.mubr.msk.f32.vlgmr.msra.gmra.mrb[6].mxu0 %vm76_vm2, %v591_v25 }
 0x6c9   :  { %v674_v32 = vpop.f32.mrb[6].mxu0 }
 0x6ca   :  { %v675_v33 = vadd.f32 %v797_v31, %v674_v32  ;;  %v917_v34 = vpop.f32.mrb[7].mxu0 }
 0x6cc   :  { %v678_v35 = vmul.f32 0.2, %v675_v33 }
 0x6ce   :  { %v679_v36 = vmax.f32 %v675_v33, %v678_v35 }
 0x6d0   :  { %927 = vmatmul.mubr.msk.f32.vlgmr.msra.gmra.mrb[6].mxu1 %vm76_vm2, %v679_v36 }
 0x7a3   :  { %v762_v38 = vpop.f32.mrb[6].mxu1 }
 0x7a4   :  { %v763_v39 = vadd.f32 %v799_v37, %v762_v38  ;;  %v928_v40 = vpop.f32.mrb[7].mxu1 }
 0x7a6   :  { %v766_v41 = vmul.f32 0.2, %v763_v39 }
 0x7a8   :  { %v767_v6 = vmax.f32 %v763_v39, %v766_v41 }
 0x7aa   :  { %768 = vst.msk [vmem:[#allocation8] sm:$0x3] %vm56_vm0, %v767_v6 }
 0x7ab   :  { %1067 = shalt.err (!%p1064_p0)
}
 0x7ac   :  { %s1068_s27 = scalar_lea.hbm %s1208_s3, 32 }
 0x7ad   :  { %p1069_p1 = scmp.ne.s32.totalorder %s1208_s3, %s1068_s27  ;;  %p1072_p2 = scmp.lt.u32.totalorder %s1068_s27, %s1208_s3 }
 0x7af   :  { %p1074_p3 = pnand %p1072_p2, %p1069_p1 }
 0x7b1   :  { %1077 = shalt.err (!%p1074_p3)
}
 0x7b2   :  { %778 = dma.vmem_to_hbm [thread:$0]  %s776_s23, 32, %s1208_s3, [#allocation4]  }
 0x7b3   :  { %1082 = dma.done.wait [#allocation4], 32  }
 0x7b4   :  { %1083 = vsyncadd [#allocation4], 4294967264 }
 0x7b5   :  { %782 = vsyncpa [#allocation3], 1 }
 0x7b6   :  { %783 = vsyncpa [#allocation6], 1 }
 0x7b7   :  { %784 = vsyncpa [#allocation4], 1 }

</bundles_post_ra>
